<compile_context>
chip_gen: v7x
topology: tpu7x:2x2x1
jax: 0.10.0
libtpu: 0.0.40
codegen_flags: <defaults>
</compile_context>

<pallas_src>
import jax
import jax.numpy as jnp
from jax.experimental import pallas as pl
from jax.experimental.pallas import tpu as pltpu


def _round_up(n: int, m: int) -> int:
    return ((n + m - 1) // m) * m


def cnn1d_kernel(x_ref, w1t_ref, b1_ref, wd_ref, bd_ref, ot_ref):
    # x_ref : (TB, C)  batch tile, native HBM layout (no host transpose)
    # w1t   : (H, C)   Conv1d(k=1) weight, VMEM-resident across grid steps
    # b1    : (H, 1)
    # wd    : (H, 1)   fc weight column difference  w2[:, 0] - w2[:, 1]
    # bd    : (1, 1)   fc bias difference           b2[0]   - b2[1]
    # ot    : (2, TB)  softmax probabilities, batch on lanes (lane-dense stores)
    #
    # Conv1d(kernel_size=1) over a length-1 spatial axis == dense layer.
    # Contract the C axis of BOTH operands (NT matmul, same form as q @ k.T):
    # the batch tile lands on lanes of the (H, TB) result without any
    # host-side transpose of x.
    h = jax.lax.dot_general(
        w1t_ref[...], x_ref[...],
        dimension_numbers=(((1,), (1,)), ((), ())),
        preferred_element_type=jnp.float32)                       # MXU
    h = jnp.maximum(h + b1_ref[...], 0.0)                         # bias + ReLU (VPU)
    # MaxPool1d(feature_num) over the length-1 spatial dim is the identity
    # (feature_num == 1 is the only valid config of the PyTorch module).
    # Linear(out_size -> 2) + softmax(dim=1) folded into the logit difference:
    #   softmax([a, b]) == [sigmoid(a - b), sigmoid(b - a)]  (exact)
    d = jnp.sum(h * wd_ref[...], axis=0, keepdims=True) + bd_ref[...]   # (1, TB)
    # Exact f32 sigmoid of +/- d (exp runs on the EUP slot).  An approximate
    # reciprocal would also work, but this kernel is HBM-bound so the exact
    # divide is free and keeps full f32 accuracy (incl. tiny probabilities).
    ot_ref[0:1, :] = (1.0 / (1.0 + jnp.exp(-d))).astype(ot_ref.dtype)
    ot_ref[1:2, :] = (1.0 / (1.0 + jnp.exp(d))).astype(ot_ref.dtype)


def cnn_1d_forward(x, w1, b1, w2, b2, *, feature_num: int = 1,
                   max_tile_b: int = 32768,
                   vmem_budget_bytes: int = 16 << 20,
                   vmem_limit_bytes: int = 32 << 20):
    """Forward pass of the PyTorch `cnn_1d` module.

    x : (B, input_size) (the unsqueezed length-1 W axis is dropped)
    w1: (input_size, out_size)   Conv1d weight (out, in, 1) transposed
    b1: (out_size,)
    w2: (out_size, 2)            Linear weight (2, out) transposed
    b2: (2,)
    returns (B, 2) softmax probabilities.
    """
    # The MaxPool-is-identity fold only holds for feature_num == 1, which is
    # the only config that is valid after x.unsqueeze(2) in the original module.
    assert feature_num == 1, "cnn_1d forward is only defined for feature_num == 1"

    B, C = x.shape
    H = w1.shape[1]

    # ---- Batch tile from a per-generation-safe VMEM formula -----------------
    # Conservative per-batch-row VMEM footprint (f32 bytes), counting the
    # (8, 128)-tiling padding Mosaic applies:
    #   * double-buffered (tb, C) input tile  -> last dim lane-padded to 128
    #   * double-buffered (2, tb) output tile -> sublanes padded to 8
    #   * in-kernel (C, tb) matmul operand + (H, tb) hidden/epilogue temporaries
    bytes_per_row = 4 * (
        2 * _round_up(C, 128)      # x tiles (double-buffered, lane-padded)
        + 2 * 8                    # out tiles (double-buffered, sublane-padded)
        + _round_up(C, 8)          # transposed x operand fed to the MXU
        + 2 * _round_up(H, 8))     # hidden activations / epilogue temporaries
    tb = (vmem_budget_bytes // bytes_per_row) // 128 * 128
    tb = max(128, min(max_tile_b, tb))
    # Keep >= 2 grid steps for large batches so the "parallel" batch axis can
    # shard across v7x's two TensorCores (no-op on single-TC v5e/v6e), and
    # don't over-tile tiny batches.
    tb = min(tb, max(128, _round_up(pl.cdiv(B, 2), 128)))
    grid = (pl.cdiv(B, tb),)

    # Tiny-parameter layout plumbing (a few KiB, done once).
    w1_t = jnp.asarray(w1, jnp.float32).T                        # (H, C)
    b1_c = jnp.reshape(jnp.asarray(b1, jnp.float32), (H, 1))     # (H, 1)
    wd = jnp.reshape(w2[:, 0] - w2[:, 1], (H, 1)).astype(jnp.float32)
    bd = jnp.reshape(b2[0] - b2[1], (1, 1)).astype(jnp.float32)

    out_t = pl.pallas_call(
        cnn1d_kernel,
        out_shape=jax.ShapeDtypeStruct((2, B), jnp.float32),
        grid=grid,
        in_specs=[
            # x streamed directly from its (B, C) HBM layout; ragged trailing
            # block handled by Pallas (padded reads, masked writes).
            pl.BlockSpec((tb, C), lambda i: (i, 0)),
            # weights/biases: constant index maps -> VMEM-resident across steps
            pl.BlockSpec((H, C), lambda i: (0, 0)),
            pl.BlockSpec((H, 1), lambda i: (0, 0)),
            pl.BlockSpec((H, 1), lambda i: (0, 0)),
            pl.BlockSpec((1, 1), lambda i: (0, 0)),
        ],
        # lane-dense output: batch on lanes
        out_specs=pl.BlockSpec((2, tb), lambda i: (0, i)),
        compiler_params=pltpu.CompilerParams(
            # batch axis is embarrassingly parallel -> both TCs on v7x
            dimension_semantics=("parallel",),
            vmem_limit_bytes=vmem_limit_bytes,
        ),
        cost_estimate=pl.CostEstimate(
            flops=2 * B * H * (C + 1),
            transcendentals=2 * B,
            bytes_accessed=B * (C + 2) * 4 + (H * C + 2 * H + 1) * 4,
        ),
    )(x.astype(jnp.float32), w1_t, b1_c, wd, bd)

    # Back to the PyTorch (B, 2) layout (tiny: 8 bytes per row).
    return out_t.T


def reference_forward(x, w1, b1, w2, b2):
    h = jnp.maximum(x @ w1 + b1[None, :], 0.0)
    logits = h @ w2 + b2[None, :]
    return jax.nn.softmax(logits, axis=1)


if __name__ == "__main__":
    # Module config: input_size=16, feature_num=1 (the only value valid after
    # unsqueeze(2)), out_size=32.
    input_size, feature_num, out_size = 16, 1, 32

    key = jax.random.PRNGKey(0)
    kx1, kx2, k1, k2, k3, k4 = jax.random.split(key, 6)

    # Deterministic synthetic parameters (Conv1d k=1 weight and Linear weight,
    # stored transposed for matmul).
    w1 = (jax.random.normal(k1, (input_size, out_size), dtype=jnp.float32)
          * (1.0 / jnp.sqrt(input_size)))
    b1 = jax.random.normal(k2, (out_size,), dtype=jnp.float32) * 0.1
    w2 = (jax.random.normal(k3, (out_size, 2), dtype=jnp.float32)
          * (1.0 / jnp.sqrt(out_size)))
    b2 = jax.random.normal(k4, (2,), dtype=jnp.float32) * 0.1

    # Two small batches: B=8 (single partial block) and B=300 (multi-step
    # ragged grid) to exercise both pipeline paths.
    for batch, kx in ((8, kx1), (300, kx2)):
        x = jax.random.normal(kx, (batch, input_size), dtype=jnp.float32)
        out = jax.block_until_ready(
            cnn_1d_forward(x, w1, b1, w2, b2, feature_num=feature_num))
        ref = reference_forward(x, w1, b1, w2, b2)
        assert out.shape == (batch, 2)
        assert jnp.allclose(out, ref, atol=1e-5, rtol=1e-5)
        assert jnp.allclose(jnp.sum(out, axis=1), 1.0, atol=1e-5)

    print("KERNEL_OK")
</pallas_src>

<mosaic_0001>
module attributes {stable_mosaic.version = 11 : i64} {
  func.func @cnn1d_kernel(%arg0: i32, %arg1: memref<128x16xf32, #tpu.memory_space<vmem>>, %arg2: memref<32x16xf32, #tpu.memory_space<vmem>>, %arg3: memref<32x1xf32, #tpu.memory_space<vmem>>, %arg4: memref<32x1xf32, #tpu.memory_space<vmem>>, %arg5: memref<1x1xf32, #tpu.memory_space<vmem>>, %arg6: memref<2x128xf32, #tpu.memory_space<vmem>>) attributes {dimension_semantics = [#tpu.dimension_semantics<parallel>], iteration_bounds = array<i64: 1>, scalar_prefetch = 0 : i64, scratch_operands = 0 : i64, tpu.core_type = #tpu.core_type<tc>, window_params = [{transform_indices = @transform_0, window_bounds = array<i64: 128, 16>}, {pipeline_mode = #tpu.pipeline_mode<synchronous>, transform_indices = @transform_1, window_bounds = array<i64: 32, 16>}, {pipeline_mode = #tpu.pipeline_mode<synchronous>, transform_indices = @transform_2, window_bounds = array<i64: 32, 1>}, {pipeline_mode = #tpu.pipeline_mode<synchronous>, transform_indices = @transform_3, window_bounds = array<i64: 32, 1>}, {pipeline_mode = #tpu.pipeline_mode<synchronous>, transform_indices = @transform_4, window_bounds = array<i64: 1, 1>}, {transform_indices = @transform_5, window_bounds = array<i64: 2, 128>}]} {
    %c0 = arith.constant 0 : index
    %c0_0 = arith.constant 0 : index
    %0 = vector.load %arg2[%c0, %c0_0] : memref<32x16xf32, #tpu.memory_space<vmem>>, vector<32x16xf32>
    %c0_1 = arith.constant 0 : index
    %c0_2 = arith.constant 0 : index
    %1 = vector.load %arg1[%c0_1, %c0_2] : memref<128x16xf32, #tpu.memory_space<vmem>>, vector<128x16xf32>
    %cst = arith.constant dense<0.000000e+00> : vector<32x128xf32>
    %2 = tpu.matmul %0, %1, %cst {dimension_numbers = #tpu.dot_dimension_numbers<[1], [1], [0], [0], [0, 0, 1, 0], [], []>} : vector<32x16xf32>, vector<128x16xf32>, vector<32x128xf32> -> vector<32x128xf32>
    %c0_3 = arith.constant 0 : index
    %c0_4 = arith.constant 0 : index
    %3 = vector.load %arg3[%c0_3, %c0_4] : memref<32x1xf32, #tpu.memory_space<vmem>>, vector<32x1xf32>
    %4 = vector.broadcast %3 : vector<32x1xf32> to vector<32x128xf32>
    %5 = arith.addf %2, %4 : vector<32x128xf32>
    %cst_5 = arith.constant 0.000000e+00 : f32
    %6 = vector.broadcast %cst_5 : f32 to vector<32x128xf32>
    %7 = arith.maximumf %5, %6 : vector<32x128xf32>
    %c0_6 = arith.constant 0 : index
    %c0_7 = arith.constant 0 : index
    %8 = vector.load %arg4[%c0_6, %c0_7] : memref<32x1xf32, #tpu.memory_space<vmem>>, vector<32x1xf32>
    %9 = vector.broadcast %8 : vector<32x1xf32> to vector<32x128xf32>
    %10 = arith.mulf %7, %9 : vector<32x128xf32>
    %cst_8 = arith.constant dense<0.000000e+00> : vector<128xf32>
    %11 = vector.multi_reduction <add>, %10, %cst_8 [0] : vector<32x128xf32> to vector<128xf32>
    %12 = vector.shape_cast %11 : vector<128xf32> to vector<1x128xf32>
    %c0_9 = arith.constant 0 : index
    %c0_10 = arith.constant 0 : index
    %13 = vector.load %arg5[%c0_9, %c0_10] : memref<1x1xf32, #tpu.memory_space<vmem>>, vector<1x1xf32>
    %14 = vector.broadcast %13 : vector<1x1xf32> to vector<1x128xf32>
    %15 = arith.addf %12, %14 : vector<1x128xf32>
    %cst_11 = arith.constant 0.000000e+00 : f32
    %16 = vector.broadcast %cst_11 : f32 to vector<1x128xf32>
    %17 = arith.subf %16, %15 : vector<1x128xf32>
    %18 = math.exp %17 : vector<1x128xf32>
    %cst_12 = arith.constant 1.000000e+00 : f32
    %19 = vector.broadcast %cst_12 : f32 to vector<1x128xf32>
    %20 = arith.addf %19, %18 : vector<1x128xf32>
    %cst_13 = arith.constant 1.000000e+00 : f32
    %21 = vector.broadcast %cst_13 : f32 to vector<1x128xf32>
    %22 = arith.divf %21, %20 : vector<1x128xf32>
    %c0_14 = arith.constant 0 : index
    %c0_15 = arith.constant 0 : index
    %23 = vector.load %arg6[%c0_14, %c0_15] : memref<2x128xf32, #tpu.memory_space<vmem>>, vector<1x128xf32>
    tpu.vector_store %arg6[%c0_14, %c0_15], %22 {strides = array<i32>} : memref<2x128xf32, #tpu.memory_space<vmem>>, vector<1x128xf32>,
    %24 = math.exp %15 : vector<1x128xf32>
    %cst_16 = arith.constant 1.000000e+00 : f32
    %25 = vector.broadcast %cst_16 : f32 to vector<1x128xf32>
    %26 = arith.addf %25, %24 : vector<1x128xf32>
    %cst_17 = arith.constant 1.000000e+00 : f32
    %27 = vector.broadcast %cst_17 : f32 to vector<1x128xf32>
    %28 = arith.divf %27, %26 : vector<1x128xf32>
    %c1 = arith.constant 1 : index
    %c0_18 = arith.constant 0 : index
    %29 = vector.load %arg6[%c1, %c0_18] : memref<2x128xf32, #tpu.memory_space<vmem>>, vector<1x128xf32>
    tpu.vector_store %arg6[%c1, %c0_18], %28 {strides = array<i32>} : memref<2x128xf32, #tpu.memory_space<vmem>>, vector<1x128xf32>,
    return
  }
  func.func @transform_0(%arg0: i32) -> (i32, i32) {
    %c0_i32 = arith.constant 0 : i32
    %c0_i32_0 = arith.constant 0 : i32
    return %arg0, %c0_i32 : i32, i32
  }
  func.func @transform_1(%arg0: i32) -> (i32, i32) {
    %c0_i32 = arith.constant 0 : i32
    %c0_i32_0 = arith.constant 0 : i32
    %c0_i32_1 = arith.constant 0 : i32
    return %c0_i32, %c0_i32_0 : i32, i32
  }
  func.func @transform_2(%arg0: i32) -> (i32, i32) {
    %c0_i32 = arith.constant 0 : i32
    %c0_i32_0 = arith.constant 0 : i32
    %c0_i32_1 = arith.constant 0 : i32
    return %c0_i32, %c0_i32_0 : i32, i32
  }
  func.func @transform_3(%arg0: i32) -> (i32, i32) {
    %c0_i32 = arith.constant 0 : i32
    %c0_i32_0 = arith.constant 0 : i32
    %c0_i32_1 = arith.constant 0 : i32
    return %c0_i32, %c0_i32_0 : i32, i32
  }
  func.func @transform_4(%arg0: i32) -> (i32, i32) {
    %c0_i32 = arith.constant 0 : i32
    %c0_i32_0 = arith.constant 0 : i32
    %c0_i32_1 = arith.constant 0 : i32
    return %c0_i32, %c0_i32_0 : i32, i32
  }
  func.func @transform_5(%arg0: i32) -> (i32, i32) {
    %c0_i32 = arith.constant 0 : i32
    %c0_i32_0 = arith.constant 0 : i32
    return %c0_i32, %arg0 : i32, i32
  }
}

</mosaic_0001>

<bundles_post_ra>
// kernel: tpu_custom_call.1
= control target key start
LH: loop header
LB: loop body
LE: loop exit
PB: predicated region body
PF: predicated region fallthrough
CT: control target
= control target key end

     0   :  { %s675_s0 = inlined_call_operand.vmem [shape: f32[8,16], index: 0, kind: input, shape index: {}]   ;;  %s676_s1 = inlined_call_operand.vmem [shape: f32[32,16], index: 1, kind: input, shape index: {}]   ;;  %s677_s2 = inlined_call_operand.vmem [shape: f32[32,1], index: 2, kind: input, shape index: {}]   ;;  %s678_s3 = inlined_call_operand.vmem [shape: f32[32,1], index: 3, kind: input, shape index: {}]   ;;  %s679_s4 = inlined_call_operand.<no memory space> [shape: f32[1,1], index: 4, kind: input, shape index: {}]   ;;  %s680_s5 = inlined_call_operand.hbm [shape: f32[2,8], index: 5, kind: output, shape index: {}]  }
   0x1   :  { %v10_v0 = vstv %s679_s4 }
   0x2   :  { %11 = vst [vmem:[#allocation2] sm:$0x1] %v10_v0 }
   0x3   :  { %v27_v1 = vld [vmem:[%s675_s0] sm:$0xff]  ;;  %v28_v2 = vld [vmem:[%s675_s0 + $0x8] sm:$0xff]  ;;  %vm67_vm0 = vcmask 130048   ;;  %v29_v3 = vld [vmem:[%s675_s0 + $0x10] sm:$0xff]  ;;  %v470_v7 = vmov 0  }
   0x4   :  { %v370_v4 = vpack.c.bf16 %v28_v2, %v27_v1  ;;  %vm516_vm1 = vmpackc.low %vm67_vm0, %vm67_vm0  ;;  %v30_v6 = vld [vmem:[%s675_s0 + $0x18] sm:$0xff]  ;;  %436 = vset.pattern.permute.xlu0 %v470_v7  ;;  %437 = vset.pattern.permute.xlu1 %v470_v7  ;;  %v23_v9 = vld [vmem:[%s676_s1] sm:$0xff] }
   0x5   :  { %v376_v8 = vpack.c.bf16 %v30_v6, %v29_v3  ;;  %v31_v10 = vld [vmem:[%s675_s0 + $0x20] sm:$0xff]  ;;  %v32_v11 = vld [vmem:[%s675_s0 + $0x28] sm:$0xff]  ;;  %364 = vmatprep.mubr.msk.f32.mxu0 %vm67_vm0, %v23_v9  ;;  %v25_v12 = vld [vmem:[%s676_s1 + $0x10] sm:$0xff] }
   0x6   :  { %372 = vmatprep.subr.msk.bf16.mxu0 %vm516_vm1, %v370_v4  ;;  %418 = vmatprep.subr.msk.bf16.mxu1 %vm516_vm1, %v370_v4  ;;  %v43_v13 = vld [vmem:[%s677_s2] sm:$0xff]  ;;  %v45_v14 = vld [vmem:[%s677_s2 + $0x10] sm:$0xff]  ;;  %v382_v15 = vpack.c.bf16 %v32_v11, %v31_v10 }
   0x7   :  { %375 = vmatpush3.bf16.xpose.msk.msra.mxu0 %vm516_vm1, %v370_v4  ;;  %426 = vmatpush3.bf16.xpose.msk.msra.mxu1 %vm516_vm1, %v370_v4 }
   0x8   :  { %378 = vmatprep.subr.msk.bf16.mxu0 %vm516_vm1, %v376_v8  ;;  %419 = vmatprep.subr.msk.bf16.mxu1 %vm516_vm1, %v376_v8 }
   0x9   :  { %367 = vmatprep.mubr.msk.f32.mxu1 %vm67_vm0, %v25_v12  ;;  %49 = vperm.xlu0 %436, %v43_v13  }
   0xa   :  { %59 = vperm.xlu1 %437, %v45_v14  }
   0xb   :  { %12 = vsyncpa [#allocation4], 0  ;;  %v44_v16 = vld [vmem:[%s677_s2 + $0x8] sm:$0xff]  ;;  %v46_v17 = vld [vmem:[%s677_s2 + $0x18] sm:$0xff]  ;;  %v260_v2 = vlaneseq }
   0xc   :  { %v33_v18 = vld [vmem:[%s675_s0 + $0x30] sm:$0xff]  ;;  %v34_v19 = vld [vmem:[%s675_s0 + $0x38] sm:$0xff]  ;;  %v217_v20 = vld [vmem:[%s678_s3] sm:$0xff] }
   0xd   :  { %54 = vperm.xlu0 %436, %v44_v16   ;;  %v218_v21 = vld [vmem:[%s678_s3 + $0x8] sm:$0xff]  ;;  %v388_v22 = vpack.c.bf16 %v34_v19, %v33_v18  ;;  %v219_v23 = vld [vmem:[%s678_s3 + $0x10] sm:$0xff]  ;;  %v220_v24 = vld [vmem:[%s678_s3 + $0x18] sm:$0xff]  ;;  %v261_v5 = vshrl.u32 %v260_v2, 7 }
   0xe   :  { %64 = vperm.xlu1 %437, %v46_v17   ;;  %v35_v25 = vld [vmem:[%s675_s0 + $0x40] sm:$0xff]  ;;  %v36_v26 = vld [vmem:[%s675_s0 + $0x48] sm:$0xff]  ;;  %v37_v29 = vld [vmem:[%s675_s0 + $0x50] sm:$0xff] }
   0xf   :  { %381 = vmatpush3.bf16.xpose.msk.msra.mxu0 %vm516_vm1, %v376_v8  ;;  %427 = vmatpush3.bf16.xpose.msk.msra.mxu1 %vm516_vm1, %v376_v8  ;;  %v254_v27 = vld [vmem:[#allocation2] sm:$0x1]  ;;  %v394_v28 = vpack.c.bf16 %v36_v26, %v35_v25  ;;  %v38_v30 = vld [vmem:[%s675_s0 + $0x58] sm:$0xff]  ;;  %v40_v33 = vld [vmem:[%s675_s0 + $0x68] sm:$0xff]  ;;  %v262_v8 = vsub.s32 0, %v261_v5 }
  0x10   :  { %384 = vmatprep.subr.msk.bf16.mxu0 %vm516_vm1, %v382_v15  ;;  %420 = vmatprep.subr.msk.bf16.mxu1 %vm516_vm1, %v382_v15  ;;  %v400_v31 = vpack.c.bf16 %v38_v30, %v37_v29  ;;  %v39_v32 = vld [vmem:[%s675_s0 + $0x60] sm:$0xff]  ;;  %v41_v35 = vld [vmem:[%s675_s0 + $0x70] sm:$0xff]  ;;  %v42_v36 = vld [vmem:[%s675_s0 + $0x78] sm:$0xff] }
  0x11   :  { %223 = vperm.xlu0 %436, %v217_v20   ;;  %v406_v34 = vpack.c.bf16 %v40_v33, %v39_v32  ;;  %v412_v37 = vpack.c.bf16 %v42_v36, %v41_v35  ;;  %v24_v38 = vld [vmem:[%s676_s1 + $0x8] sm:$0xff]  ;;  %v26_v39 = vld [vmem:[%s676_s1 + $0x18] sm:$0xff]  ;;  %s471_s1 = smov [#allocation3]  }
  0x12   :  { %228 = vperm.xlu1 %437, %v218_v21   ;;  %s284_s21 = sshll.u32 %s471_s1, 4  ;;  %s285_s21 = int_to_ptr.vmem [resolvable:$true] %s284_s21 }
  0x13   :  { %s446_s2 = scalar_lea.vmem %s285_s21, 32  ;;  %p451_p1 = scmp.lt.s32.totalorder %s285_s21, %s285_s21 }
  0x14   :  { %p447_p0 = scmp.ne.s32.totalorder %s285_s21, %s446_s2  ;;  %p452_p2 = scmp.lt.s32.totalorder %s446_s2, %s446_s2 }
  0x15   :  { %233 = vperm.xlu0 %436, %v219_v23  }
  0x16   :  { %238 = vperm.xlu1 %437, %v220_v24   ;;  %p453_p3 = por %p452_p2, %p451_p1 }
  0x17   :  { %387 = vmatpush3.bf16.xpose.msk.msra.mxu0 %vm516_vm1, %v382_v15  ;;  %428 = vmatpush3.bf16.xpose.msk.msra.mxu1 %vm516_vm1, %v382_v15 }
  0x18   :  { %390 = vmatprep.subr.msk.bf16.mxu0 %vm516_vm1, %v388_v22  ;;  %421 = vmatprep.subr.msk.bf16.mxu1 %vm516_vm1, %v388_v22  ;;  %p454_p4 = pnand %p453_p3, %p447_p0 }
  0x19   :  { %257 = vperm.xlu0 %436, %v254_v27  }
  0x1f   :  { %393 = vmatpush3.bf16.xpose.msk.msra.mxu0 %vm516_vm1, %v388_v22  ;;  %429 = vmatpush3.bf16.xpose.msk.msra.mxu1 %vm516_vm1, %v388_v22 }
  0x20   :  { %396 = vmatprep.subr.msk.bf16.mxu0 %vm516_vm1, %v394_v28  ;;  %422 = vmatprep.subr.msk.bf16.mxu1 %vm516_vm1, %v394_v28 }
  0x27   :  { %399 = vmatpush3.bf16.xpose.msk.msra.mxu0 %vm516_vm1, %v394_v28  ;;  %430 = vmatpush3.bf16.xpose.msk.msra.mxu1 %vm516_vm1, %v394_v28 }
  0x28   :  { %402 = vmatprep.subr.msk.bf16.mxu0 %vm516_vm1, %v400_v31  ;;  %423 = vmatprep.subr.msk.bf16.mxu1 %vm516_vm1, %v400_v31 }
  0x2f   :  { %405 = vmatpush3.bf16.xpose.msk.msra.mxu0 %vm516_vm1, %v400_v31  ;;  %431 = vmatpush3.bf16.xpose.msk.msra.mxu1 %vm516_vm1, %v400_v31 }
  0x30   :  { %408 = vmatprep.subr.msk.bf16.mxu0 %vm516_vm1, %v406_v34  ;;  %424 = vmatprep.subr.msk.bf16.mxu1 %vm516_vm1, %v406_v34 }
  0x37   :  { %411 = vmatpush3.bf16.xpose.msk.msra.mxu0 %vm516_vm1, %v406_v34  ;;  %432 = vmatpush3.bf16.xpose.msk.msra.mxu1 %vm516_vm1, %v406_v34 }
  0x38   :  { %414 = vmatprep.subr.msk.bf16.mxu0 %vm516_vm1, %v412_v37  ;;  %425 = vmatprep.subr.msk.bf16.mxu1 %vm516_vm1, %v412_v37 }
  0x3f   :  { %417 = vmatpush3.bf16.xpose.msk.msra.mxu0 %vm516_vm1, %v412_v37  ;;  %433 = vmatpush3.bf16.xpose.msk.msra.mxu1 %vm516_vm1, %v412_v37 }
  0x46   :  { %365 = vmatmul.mubr.msk.f32.vlgmr.msra.gmra.mrb[0].mxu0 %vm67_vm0, %v24_v38  ;;  %368 = vmatmul.mubr.msk.f32.vlgmr.msra.gmra.mrb[0].mxu1 %vm67_vm0, %v26_v39 }
  0x88   :  { %v50_v40 = vpop.permute.xlu0 %49 }
  0x89   :  { %v60_v41 = vpop.permute.xlu1 %59 }
  0x8c   :  { %v55_v42 = vpop.permute.xlu0 %54 }
  0x8d   :  { %v65_v43 = vpop.permute.xlu1 %64 }
  0x90   :  { %v224_v44 = vpop.permute.xlu0 %223 }
  0x91   :  { %v229_v53 = vpop.permute.xlu1 %228 }
  0x94   :  { %v234_v60 = vpop.permute.xlu0 %233 }
  0x95   :  { %v239_v63 = vpop.permute.xlu1 %238 }
  0x98   :  { %v258_v10 = vpop.permute.xlu0 %257 }
  0x99   :  { %v263_v12 = vrot.slane %v258_v10, %v262_v8 }
 0x119   :  { %v366_v45 = vpop.f32.mrb[0].mxu0  ;;  %v369_v46 = vpop.f32.mrb[0].mxu1 }
 0x11a   :  { %v200_v47 = vadd.f32 %v366_v45, %v55_v42  ;;  %v194_v48 = vpop.f32.mrb[1].mxu0  ;;  %v204_v49 = vpop.f32.mrb[1].mxu1  ;;  %v210_v50 = vadd.f32 %v369_v46, %v65_v43 }
 0x11b   :  { %v195_v51 = vadd.f32 %v194_v48, %v50_v40  ;;  %v205_v52 = vadd.f32 %v204_v49, %v60_v41 }
 0x11c   :  { %v214_v54 = vmax.f32 %v200_v47, 0.0  ;;  %v216_v58 = vmax.f32 %v210_v50, 0.0 }
 0x11d   :  { %v213_v55 = vmax.f32 %v195_v51, 0.0  ;;  %v215_v56 = vmax.f32 %v205_v52, 0.0 }
 0x11e   :  { %v242_v57 = vmul.f32 %v229_v53, %v214_v54  ;;  %v244_v0 = vmul.f32 %v239_v63, %v216_v58 }
 0x11f   :  { %v241_v59 = vmul.f32 %v224_v44, %v213_v55  ;;  %v243_v62 = vmul.f32 %v234_v60, %v215_v56 }
 0x121   :  { %v245_v61 = vadd.f32 %v242_v57, %v241_v59 }
 0x123   :  { %v246_v1 = vadd.f32 %v245_v61, %v243_v62 }
 0x125   :  { %v247_v3 = vadd.f32 %v246_v1, %v244_v0 }
 0x127   :  { %v248_v4 = vrot.slane %v247_v3, 4 }
 0x129   :  { %v249_v6 = vadd.f32 %v248_v4, %v247_v3 }
 0x12b   :  { %v250_v7 = vrot.slane %v249_v6, 2 }
 0x12d   :  { %v251_v9 = vadd.f32 %v250_v7, %v249_v6 }
 0x12f   :  { %v252_v11 = vrot.slane %v251_v9, 1 }
 0x131   :  { %v253_v13 = vadd.f32 %v252_v11, %v251_v9 }
 0x133   :  { %v264_v14 = vadd.f32 %v263_v12, %v253_v13 }
 0x135   :  { %v265_v15 = vsub.f32 0.0, %v264_v14  ;;  %v272_v16 = vmul.f32 1.442695, %v264_v14 }
 0x137   :  { %v266_v17 = vmul.f32 1.442695, %v265_v15  ;;  %438 = vpow2.f32 %v272_v16 }
 0x139   :  { %440 = vpow2.f32 %v266_v17 }
 0x141   :  { %v439_v18 = vpop.eup %438 }
 0x142   :  { %v274_v19 = vadd.f32 1.0, %v439_v18 }
 0x143   :  { %v441_v20 = vpop.eup %440 }
 0x144   :  { %v268_v21 = vadd.f32 1.0, %v441_v20  ;;  %442 = vrcp.f32 %v274_v19 }
 0x146   :  { %444 = vrcp.f32 %v268_v21 }
 0x14e   :  { %v443_v22 = vpop.eup %442 }
 0x14f   :  { %277 = vst [vmem:[#allocation3 + $0x1] sm:$0x1] %v443_v22 }
 0x150   :  { %v445_v23 = vpop.eup %444 }
 0x151   :  { %271 = vst [vmem:[#allocation3] sm:$0x1] %v445_v23 }
 0x152   :  { %457 = shalt.err (!%p454_p4)
}
 0x153   :  { %s458_s24 = scalar_lea.hbm %s680_s5, 32 }
 0x154   :  { %p459_p5 = scmp.ne.s32.totalorder %s680_s5, %s458_s24  ;;  %p462_p6 = scmp.lt.u32.totalorder %s458_s24, %s680_s5 }
 0x156   :  { %p464_p7 = pnand %p462_p6, %p459_p5 }
 0x158   :  { %467 = shalt.err (!%p464_p7)
}
 0x159   :  { %287 = dma.vmem_to_hbm [thread:$0]  %s285_s21, 32, %s680_s5, [#allocation4]  }
 0x15a   :  { %468 = dma.done.wait [#allocation4], 32  }
 0x15b   :  { %469 = vsyncadd [#allocation4], 4294967264 }
 0x15c   :  { %291 = vsyncpa [#allocation4], 1 }

</bundles_post_ra>
